<compile_context>
chip_gen: v7x
topology: tpu7x:2x2x1
jax: 0.10.0
libtpu: 0.0.40
codegen_flags: <defaults>
</compile_context>

<pallas_src>
import numpy as np
import jax
import jax.numpy as jnp
from jax.experimental import pallas as pl
from jax.experimental.pallas import tpu as pltpu


def _round_up(x, m):
    return (x + m - 1) // m * m


# ---------------------------------------------------------------------------
# Kernel 1: class prototypes (runs once, no grid)
# ---------------------------------------------------------------------------
def _proto_kernel(scale_ref, oh_sT_ref, sup_ref, inv_cnt_ref, prots_ref):
    scale = scale_ref[0]                               # scalar from SMEM
    oh_sT = oh_sT_ref[...]                             # (W, S), embedding dtype
    sup = sup_ref[...]                                 # (S, Dp), embedding dtype

    # canonical (M,K)x(K,N) — no XLU relayout before the MXU push
    prot_sum = jax.lax.dot_general(
        oh_sT, sup, (((1,), (0,)), ((), ())),
        preferred_element_type=jnp.float32)            # (W, Dp) f32

    prots = prot_sum * inv_cnt_ref[...]                # (W,1) precomputed 1/count (0 if empty class)

    ss = jnp.sum(prots * prots, axis=-1, keepdims=True)
    inv_norm = jax.lax.rsqrt(jnp.maximum(ss, 1e-30))   # EUP rsqrt; clamp the sum-of-squares
    # fold the learned scale into the normalized prototypes:
    #   logits = q_n @ (scale * p_n)^T == scale * cos(q, p)
    prots_ref[...] = prots * inv_norm * scale


# ---------------------------------------------------------------------------
# Kernel 2: per query-tile cosine logits + log-softmax + NLL / accuracy partials
# ---------------------------------------------------------------------------
def _query_kernel(protsT_ref, q_ref, oh_q_ref, logits_ref, preds_ref, stats_ref):
    q = q_ref[...].astype(jnp.float32)                 # (TQ, Dp) — f32 only for norm math
    oh_q = oh_q_ref[...]                               # (TQ, W) f32; all-zero rows = padding
    protsT = protsT_ref[...]                           # (Dp, W) f32, normalized & scaled

    ss = jnp.sum(q * q, axis=-1, keepdims=True)
    q_n = q * jax.lax.rsqrt(jnp.maximum(ss, 1e-30))    # rsqrt + multiply (EUP/VPU), no divide

    logits = jax.lax.dot_general(                      # (TQ, W) — canonical (M,K)x(K,N)
        q_n, protsT, (((1,), (0,)), ((), ())),
        preferred_element_type=jnp.float32)
    logits_ref[...] = logits

    # --- log-softmax ---
    m = jnp.max(logits, axis=-1, keepdims=True)
    z = logits - m
    lse = jnp.log(jnp.sum(jnp.exp(z), axis=-1, keepdims=True))
    log_p = z - lse

    # NLL; padded rows contribute 0 (their one-hot row is all zeros)
    nll = -jnp.sum(oh_q * log_p, axis=-1, keepdims=True)        # (TQ, 1)

    # argmax = first maximal index, via masked lane-min
    W = oh_q.shape[1]
    col = jax.lax.broadcasted_iota(jnp.int32, logits.shape, 1).astype(jnp.float32)
    preds_f = jnp.min(jnp.where(logits == m, col, float(W)), axis=-1, keepdims=True)
    preds_ref[...] = preds_f.astype(jnp.int32)

    # correct iff the one-hot label column matches the predicted column
    correct = jnp.sum(oh_q * (col == preds_f).astype(jnp.float32),
                      axis=-1, keepdims=True)                   # (TQ, 1)

    # per-tile partial sums packed into one lane-dense (1,1,128) row:
    #   lane 0 = sum(nll), lane 1 = #correct
    loss_sum = jnp.sum(nll, axis=0, keepdims=True)              # (1, 1)
    corr_sum = jnp.sum(correct, axis=0, keepdims=True)          # (1, 1)
    lane = jax.lax.broadcasted_iota(jnp.int32, (1, 1, 128), 2)
    stats_ref[...] = jnp.where(lane == 0, loss_sum,
                               jnp.where(lane == 1, corr_sum, 0.0))


# ---------------------------------------------------------------------------
# Wrapper
# ---------------------------------------------------------------------------
def adaptive_cosine_ncc(support_embeddings, support_labels,
                        query_embeddings, query_labels, n_way,
                        scale=10.0, return_logits=False, q_block=None):
    """JAX/Pallas equivalent of AdaptiveCosineNCC.forward."""
    S, D = support_embeddings.shape
    Q = query_embeddings.shape[0]
    emb_dtype = support_embeddings.dtype
    itemsize = int(jnp.dtype(emb_dtype).itemsize)

    # ---- pad feature dim to a lane multiple (zeros change neither dots nor norms)
    D_pad = _round_up(D, 128)
    sup = support_embeddings
    qe = query_embeddings
    if D_pad != D:
        sup = jnp.pad(sup, ((0, 0), (0, D_pad - D)))
        qe = jnp.pad(qe, ((0, 0), (0, D_pad - D)))

    # ---- glue: transposed one-hot (W,S), inverse class counts, scale parameter
    classes = jnp.arange(n_way, dtype=support_labels.dtype)
    sup_onehot = support_labels[None, :] == classes[:, None]      # (W, S) bool
    oh_sT = sup_onehot.astype(emb_dtype)                          # matches embedding dtype (bf16-safe)
    counts = jnp.sum(sup_onehot.astype(jnp.float32), axis=1, keepdims=True)
    inv_counts = jnp.where(counts > 0, 1.0 / counts, 0.0).astype(jnp.float32)
    scale_arr = jnp.full((1,), scale, jnp.float32)

    # ---- kernel 1: normalized + scaled prototypes (W, Dp)
    prots = pl.pallas_call(
        _proto_kernel,
        out_shape=jax.ShapeDtypeStruct((n_way, D_pad), jnp.float32),
        in_specs=[
            pl.BlockSpec(memory_space=pltpu.MemorySpace.SMEM),    # scale
            pl.BlockSpec(memory_space=pltpu.MemorySpace.VMEM),    # one-hot^T (W,S)
            pl.BlockSpec(memory_space=pltpu.MemorySpace.VMEM),    # support (S,Dp)
            pl.BlockSpec(memory_space=pltpu.MemorySpace.VMEM),    # inv counts (W,1)
        ],
        out_specs=pl.BlockSpec(memory_space=pltpu.MemorySpace.VMEM),
        cost_estimate=pl.CostEstimate(
            flops=2 * n_way * S * D_pad + 5 * n_way * D_pad,
            transcendentals=n_way,
            bytes_accessed=(S * D_pad * itemsize + n_way * S * itemsize
                            + 2 * n_way * D_pad * 4)),
    )(scale_arr, oh_sT, sup, inv_counts)
    protsT = prots.T                                              # (Dp, W): canonical K x N for kernel 2

    # ---- choose query tile so the double-buffered working set fits all TPU gens
    per_row = D_pad * itemsize + 2 * n_way * 4 + 4                # q row + oh/logits rows + pred
    fixed = D_pad * n_way * 4 + 128 * 4                           # resident prototypes + stats row
    if q_block is None:
        budget = 8 * 1024 * 1024                                  # ~8 MiB per pipeline stage
        tq = max(8, min(512, (budget - fixed) // per_row))
        tq = max(8, (int(tq) // 8) * 8)
        if Q <= tq:
            TQ = _round_up(Q, 8)
        else:
            n_tiles = -(-Q // tq)
            TQ = _round_up(-(-Q // n_tiles), 8)
    else:
        TQ = _round_up(min(int(q_block), Q), 8)
    Q_pad = _round_up(Q, TQ)
    num_tiles = Q_pad // TQ

    oh_q = (query_labels[:, None] == classes[None, :]).astype(jnp.float32)  # (Q, W)
    if Q_pad != Q:
        qe = jnp.pad(qe, ((0, Q_pad - Q), (0, 0)))
        oh_q = jnp.pad(oh_q, ((0, Q_pad - Q), (0, 0)))            # padded rows: all-zero one-hot

    vmem_limit = int(min(max(4 * (TQ * per_row + fixed) + (2 << 20), 16 << 20), 64 << 20))

    logits_pad, preds_pad, stats = pl.pallas_call(
        _query_kernel,
        out_shape=(
            jax.ShapeDtypeStruct((Q_pad, n_way), jnp.float32),
            jax.ShapeDtypeStruct((Q_pad, 1), jnp.int32),
            jax.ShapeDtypeStruct((num_tiles, 1, 128), jnp.float32),
        ),
        grid=(num_tiles,),
        in_specs=[
            pl.BlockSpec((D_pad, n_way), lambda i: (0, 0)),       # prototypes (resident)
            pl.BlockSpec((TQ, D_pad), lambda i: (i, 0)),          # query tile
            pl.BlockSpec((TQ, n_way), lambda i: (i, 0)),          # query one-hot tile
        ],
        out_specs=(
            pl.BlockSpec((TQ, n_way), lambda i: (i, 0)),          # logits tile
            pl.BlockSpec((TQ, 1), lambda i: (i, 0)),              # preds tile
            pl.BlockSpec((1, 1, 128), lambda i: (i, 0, 0)),       # per-tile loss/correct partials
        ),
        compiler_params=pltpu.CompilerParams(
            dimension_semantics=("parallel",),                    # megacore-shardable Q axis
            vmem_limit_bytes=vmem_limit),
        cost_estimate=pl.CostEstimate(
            flops=2 * Q_pad * n_way * D_pad + 6 * Q_pad * D_pad + 10 * Q_pad * n_way,
            transcendentals=Q_pad * (n_way + 2),
            bytes_accessed=(Q_pad * D_pad * itemsize + D_pad * n_way * 4
                            + 2 * Q_pad * n_way * 4 + Q_pad * 4
                            + num_tiles * 128 * 4)),
    )(protsT, qe, oh_q)

    logits = logits_pad[:Q]
    if return_logits:
        return logits

    # tiny final combine of per-tile partials (keeps the grid axis "parallel"-safe)
    loss = jnp.sum(stats[:, 0, 0]) / Q
    acc = jnp.sum(stats[:, 0, 1]) / Q
    preds = preds_pad[:Q, 0]
    stats_dict = {'loss': float(loss), 'acc': float(acc)}
    pred_dict = {'preds': np.asarray(preds),
                 'labels': np.asarray(query_labels, dtype=np.int64)}
    return loss, stats_dict, pred_dict


if __name__ == "__main__":
    key = jax.random.PRNGKey(0)
    n_way, shots, q_per_class, D = 5, 5, 15, 64
    S, Q = n_way * shots, n_way * q_per_class                     # 25 support, 75 query

    k1, k2 = jax.random.split(key)
    support_embeddings = jax.random.normal(k1, (S, D), jnp.float32)
    query_embeddings = jax.random.normal(k2, (Q, D), jnp.float32)
    support_labels = jnp.tile(jnp.arange(n_way, dtype=jnp.int32), shots)
    query_labels = jnp.tile(jnp.arange(n_way, dtype=jnp.int32), q_per_class)

    # n_way = len(query_labels.unique()) — computed statically on the host (shape must be static)
    n_way_static = int(np.unique(np.asarray(query_labels)).size)

    # small q_block so the run exercises the Q grid (3 tiles) + row padding
    loss, stats, pred_dict = adaptive_cosine_ncc(
        support_embeddings, support_labels, query_embeddings, query_labels,
        n_way_static, scale=10.0, q_block=32)
    jax.block_until_ready(loss)

    kernel_logits = adaptive_cosine_ncc(
        support_embeddings, support_labels, query_embeddings, query_labels,
        n_way_static, scale=10.0, return_logits=True, q_block=32)
    jax.block_until_ready(kernel_logits)

    # pure-JAX reference check
    oh_s = (support_labels[:, None] == jnp.arange(n_way)[None, :]).astype(jnp.float32)
    prots_ref = (oh_s.T @ support_embeddings) / jnp.sum(oh_s, axis=0)[:, None]
    qn = query_embeddings / jnp.maximum(
        jnp.linalg.norm(query_embeddings, axis=-1, keepdims=True), 1e-30)
    pn = prots_ref / jnp.maximum(jnp.linalg.norm(prots_ref, axis=-1, keepdims=True), 1e-30)
    ref_logits = (qn @ pn.T) * 10.0
    ref_logp = jax.nn.log_softmax(ref_logits, axis=1)
    ref_loss = -jnp.mean(ref_logp[jnp.arange(Q), query_labels])
    ref_preds = jnp.argmax(ref_logits, axis=1)
    ref_acc = jnp.mean((ref_preds == query_labels).astype(jnp.float32))

    assert np.allclose(np.asarray(kernel_logits), np.asarray(ref_logits),
                       rtol=1e-4, atol=1e-5)
    assert np.allclose(float(loss), float(ref_loss), rtol=1e-4, atol=1e-5)
    assert np.allclose(stats['acc'], float(ref_acc), rtol=1e-5, atol=1e-6)
    assert np.array_equal(pred_dict['preds'], np.asarray(ref_preds))

    print("KERNEL_OK")
</pallas_src>

<mosaic_0001>
module attributes {stable_mosaic.version = 11 : i64} {
  func.func @_proto_kernel(%arg0: memref<1xf32, #tpu.memory_space<smem>>, %arg1: memref<5x25xf32, #tpu.memory_space<vmem>>, %arg2: memref<25x128xf32, #tpu.memory_space<vmem>>, %arg3: memref<5x1xf32, #tpu.memory_space<vmem>>, %arg4: memref<5x128xf32, #tpu.memory_space<vmem>>) attributes {dimension_semantics = [], scalar_prefetch = 0 : i64, scratch_operands = 0 : i64, tpu.core_type = #tpu.core_type<tc>} {
    %c0 = arith.constant 0 : index
    %0 = memref.load %arg0[%c0] : memref<1xf32, #tpu.memory_space<smem>>
    %c0_0 = arith.constant 0 : index
    %c0_1 = arith.constant 0 : index
    %1 = vector.load %arg1[%c0_0, %c0_1] : memref<5x25xf32, #tpu.memory_space<vmem>>, vector<5x25xf32>
    %c0_2 = arith.constant 0 : index
    %c0_3 = arith.constant 0 : index
    %2 = vector.load %arg2[%c0_2, %c0_3] : memref<25x128xf32, #tpu.memory_space<vmem>>, vector<25x128xf32>
    %cst = arith.constant dense<0.000000e+00> : vector<5x128xf32>
    %3 = tpu.matmul %1, %2, %cst {dimension_numbers = #tpu.dot_dimension_numbers<[1], [0], [0], [1], [0, 0, 1, 1], [], []>} : vector<5x25xf32>, vector<25x128xf32>, vector<5x128xf32> -> vector<5x128xf32>
    %c0_4 = arith.constant 0 : index
    %c0_5 = arith.constant 0 : index
    %4 = vector.load %arg3[%c0_4, %c0_5] : memref<5x1xf32, #tpu.memory_space<vmem>>, vector<5x1xf32>
    %5 = vector.broadcast %4 : vector<5x1xf32> to vector<5x128xf32>
    %6 = arith.mulf %3, %5 : vector<5x128xf32>
    %7 = arith.mulf %6, %6 : vector<5x128xf32>
    %cst_6 = arith.constant dense<0.000000e+00> : vector<5xf32>
    %8 = vector.multi_reduction <add>, %7, %cst_6 [1] : vector<5x128xf32> to vector<5xf32>
    %9 = vector.shape_cast %8 : vector<5xf32> to vector<5x1xf32>
    %cst_7 = arith.constant 1.000000e-30 : f32
    %10 = vector.broadcast %cst_7 : f32 to vector<5x1xf32>
    %11 = arith.maximumf %9, %10 : vector<5x1xf32>
    %12 = math.rsqrt %11 : vector<5x1xf32>
    %13 = vector.broadcast %12 : vector<5x1xf32> to vector<5x128xf32>
    %14 = arith.mulf %6, %13 : vector<5x128xf32>
    %15 = vector.broadcast %0 : f32 to vector<5x128xf32>
    %16 = arith.mulf %14, %15 : vector<5x128xf32>
    %c0_8 = arith.constant 0 : index
    %c0_9 = arith.constant 0 : index
    %17 = vector.load %arg4[%c0_8, %c0_9] : memref<5x128xf32, #tpu.memory_space<vmem>>, vector<5x128xf32>
    tpu.vector_store %arg4[%c0_8, %c0_9], %16 {strides = array<i32>} : memref<5x128xf32, #tpu.memory_space<vmem>>, vector<5x128xf32>,
    return
  }
}

</mosaic_0001>

<bundles_post_ra>
// kernel: tpu_custom_call.1
= control target key start
LH: loop header
LB: loop body
LE: loop exit
PB: predicated region body
PF: predicated region fallthrough
CT: control target
= control target key end

     0   :  { %10 = vsyncpa [#allocation4], 0  ;;  %s302_s0 = inlined_call_operand.<no memory space> [shape: f32[1], index: 0, kind: input, shape index: {}]   ;;  %s303_s1 = inlined_call_operand.vmem [shape: f32[5,25], index: 1, kind: input, shape index: {}]   ;;  %s304_s2 = inlined_call_operand.hbm [shape: f32[25,128], index: 2, kind: input, shape index: {}]   ;;  %s305_s3 = inlined_call_operand.vmem [shape: f32[5,1], index: 3, kind: input, shape index: {}]   ;;  %s306_s4 = inlined_call_operand.hbm [shape: f32[5,128], index: 4, kind: output, shape index: {}]  }
   0x1   :  { %11 = vsyncpa [#allocation5], 0  ;;  %s235_s15 = smov [#allocation3]   ;;  %s187_s19 = scalar_lea.hbm %s304_s2, 512 }
   0x2   :  { %s21_s16 = sshll.u32 %s235_s15, 4  ;;  %p188_p0 = scmp.ne.s32.totalorder %s304_s2, %s187_s19  ;;  %s22_s16 = int_to_ptr.vmem [resolvable:$true] %s21_s16 }
   0x3   :  { %p191_p1 = scmp.lt.u32.totalorder %s187_s19, %s304_s2 }
   0x5   :  { %p193_p2 = pnand %p191_p1, %p188_p0 }
   0x7   :  { %196 = shalt.err (!%p193_p2)
}
   0x8   :  { %s197_s24 = scalar_lea.vmem %s22_s16, 512  ;;  %p202_p4 = scmp.lt.s32.totalorder %s22_s16, %s22_s16 }
   0x9   :  { %p198_p3 = scmp.ne.s32.totalorder %s22_s16, %s197_s24  ;;  %p203_p5 = scmp.lt.s32.totalorder %s197_s24, %s197_s24 }
   0xb   :  { %p204_p6 = por %p203_p5, %p202_p4 }
   0xd   :  { %p205_p7 = pnand %p204_p6, %p198_p3 }
   0xf   :  { %208 = shalt.err (!%p205_p7)
}
  0x10   :  { %s236_s25 = smov 128   ;;  %s237_s26 = smov 8  }
  0x11   :  { %27 = dma.hbm_to_vmem [thread:$0]  %s304_s2, 512, %s22_s16, [#allocation4], %s236_s25, %s236_s25, %s237_s26  }
  0x12   :  { %231 = dma.done.wait [#allocation4], 512  }
  0x13   :  { %232 = vsyncadd [#allocation4], 4294966784  ;;  %v238_v0 = vmov 0.0|0.0   ;;  %vm239_vm0 = vmmov 0   ;;  %v240_v1 = vmov 0.0   ;;  %v241_v2 = vmov 0  }
  0x14   :  { %168 = vmatprep.subr.bf16.mxu0 %v238_v0  ;;  %165 = vmatprep.mubr.msk.f32.mxu0 %vm239_vm0, %v240_v1  ;;  %v35_v3 = vld [vmem:[#allocation3] sm:$0xff]  ;;  %v36_v4 = vld [vmem:[#allocation3 + $0x8] sm:$0xff]  ;;  %v37_v5 = vld [vmem:[#allocation3 + $0x10] sm:$0xff]  ;;  %vm43_vm1 = vcmask 1040384   ;;  %vm242_vm2 = vmmov 1   ;;  %vm39_vm4 = vcmask 203776   ;;  %v132_v20 = vstv %s302_s0 }
  0x15   :  { %184 = vset.pattern.permute.xlu0 %v241_v2  ;;  %v169_v6 = vpack.c.bf16 %v36_v4, %v35_v3  ;;  %v38_v7 = vld [vmem:[#allocation3 + $0x18] sm:$0x1]  ;;  %v117_v8 = vld [vmem:[%s305_s3] sm:$0x1f]  ;;  %vm173_vm3 = vmpackc.low %vm43_vm1, %vm242_vm2  ;;  %vm125_vm5 = vcmask 1044480   ;;  %s243_s7 = smov [#allocation6]  }
  0x16   :  { %120 = vperm.xlu0 %184, %v117_v8   ;;  %v172_v9 = vpack.c.bf16 %v38_v7, %v37_v5  ;;  %v34_v10 = vld [vmem:[%s303_s1] sm:$0x1f]  ;;  %s141_s1 = sshll.u32 %s243_s7, 4  ;;  %s142_s1 = int_to_ptr.vmem [resolvable:$true] %s141_s1 }
  0x17   :  { %170 = vmatpush3.bf16.msra.mxu0 %v169_v6  ;;  %s209_s8 = scalar_lea.vmem %s142_s1, 128  ;;  %p214_p9 = scmp.lt.s32.totalorder %s142_s1, %s142_s1 }
  0x18   :  { %171 = vmatprep.subr.bf16.mxu0 %v238_v0  ;;  %p210_p8 = scmp.ne.s32.totalorder %s142_s1, %s209_s8  ;;  %p215_p10 = scmp.lt.s32.totalorder %s209_s8, %s209_s8 }
  0x1a   :  { %p216_p11 = por %p215_p10, %p214_p9 }
  0x1b   :  { %174 = vmatpush3.bf16.msk.msra.mxu0 %vm173_vm3, %v172_v9 }
  0x1c   :  { %p217_p12 = pnand %p216_p11, %p210_p8 }
  0x1e   :  { %166 = vmatmul.mubr.msk.f32.vlgmr.msra.gmra.mrb[0].mxu0 %vm39_vm4, %v34_v10 }
  0x95   :  { %v121_v11 = vpop.permute.xlu0 %120 }
  0xf1   :  { %v113_v12 = vpop.f32.mrb[0].mxu0 }
  0xf2   :  { %v123_v13 = vmul.f32 %v121_v11, %v113_v12  ;;  %v167_v14 = vpop.f32.mrb[1].mxu0 }
  0xf4   :  { %v124_v15 = vmul.f32 %v123_v13, %v123_v13 }
  0xf6   :  { %v126_v16 = vsel %vm125_vm5, %v124_v15, 0.0 }
  0xf7   :  { %127 = vadd.xlane.f32.xlu0 %v126_v16 }
 0x184   :  { %v128_v17 = vpop.xlane.xlu0 %127 }
 0x185   :  { %v129_v18 = vmax.f32 %v128_v17, 1e-30 }
 0x187   :  { %185 = vrsqrt.f32 %v129_v18 }
 0x191   :  { %v186_v19 = vpop.eup %185 }
 0x192   :  { %v131_v21 = vmul.f32 %v186_v19, %v123_v13 }
 0x194   :  { %v133_v22 = vmul.f32 %v132_v20, %v131_v21 }
 0x196   :  { %134 = vst [vmem:[#allocation6] sm:$0x1f] %v133_v22 }
 0x197   :  { %220 = shalt.err (!%p217_p12)
}
 0x198   :  { %s221_s11 = scalar_lea.hbm %s306_s4, 128 }
 0x199   :  { %p222_p13 = scmp.ne.s32.totalorder %s306_s4, %s221_s11  ;;  %p225_p0 = scmp.lt.u32.totalorder %s221_s11, %s306_s4 }
 0x19b   :  { %p227_p1 = pnand %p225_p0, %p222_p13 }
 0x19d   :  { %230 = shalt.err (!%p227_p1)
}
 0x19e   :  { %144 = dma.vmem_to_hbm [thread:$0]  %s142_s1, 128, %s306_s4, [#allocation5]  }
 0x19f   :  { %233 = dma.done.wait [#allocation5], 128  }
 0x1a0   :  { %234 = vsyncadd [#allocation5], 4294967168 }
 0x1a1   :  { %148 = vsyncpa [#allocation4], 1 }
 0x1a2   :  { %149 = vsyncpa [#allocation5], 1 }

</bundles_post_ra>
